<compile_context>
chip_gen: v7x
topology: tpu7x:2x2x1
jax: 0.10.0
libtpu: 0.0.40
codegen_flags: <defaults>
</compile_context>

<pallas_src>
import jax
import jax.numpy as jnp
from jax import lax
from jax.experimental import pallas as pl
from jax.experimental.pallas import tpu as pltpu


def _attention_kernel(q_ref, ctx_ref, aeab_ref, win_ref, wout_ref,
                      out_ref, attn_ref):
    D, BL = q_ref.shape          # feature dim, lane-tile of padded batch
    Q = ctx_ref.shape[0]         # query_len (context length)

    qT = q_ref[...]                                        # (D, BL)

    # linear_in (no bias):  qp^T = W_in @ q^T   -> (D, D) @ (D, BL) on the MXU
    qpT = jnp.dot(win_ref[...], qT, preferred_element_type=jnp.float32)

    # attention scores (output_len == 1):
    #   scores[q, b] = sum_d qp[d, b] * ctx[q, d, b]
    # one (D, BL) context slice per step -> cheap sublane (XLU) reduce.
    rows = []
    for q in range(Q):
        rows.append(jnp.sum(qpT * ctx_ref[q], axis=0, keepdims=True))  # (1, BL)
    scores = jnp.concatenate(rows, axis=0)                 # (Q, BL) = one vreg

    # softmax over Q (sublane axis) -- exact divide (no approx reciprocal).
    m = jnp.max(scores, axis=0, keepdims=True)
    e = jnp.exp(scores - m)
    w = e / jnp.sum(e, axis=0, keepdims=True)              # (Q, BL)
    attn_ref[...] = w

    # time-decay factor: fac[q, b] = ae[b] * exp(-ab[b] * (Q - 1 - q))
    ae = aeab_ref[0:1, :]                                   # (1, BL)
    ab = aeab_ref[1:2, :]                                   # (1, BL)
    delta = (Q - 1) - lax.broadcasted_iota(jnp.int32, (Q, BL), 0).astype(jnp.float32)
    facw = ae * jnp.exp(-ab * delta) * w                    # (Q, BL)

    # mix accumulation over Q (no (Q, D, BL) intermediates):
    #   mix_sum[d, b] = sum_q relu(facw[q,b]*ctx[q,d,b]) + w[q,b]*ctx[q,d,b]
    acc = jnp.zeros((D, BL), jnp.float32)
    for q in range(Q):
        c = ctx_ref[q]                                      # (D, BL)
        acc = acc + jnp.maximum(facw[q:q + 1, :] * c, 0.0) + w[q:q + 1, :] * c

    # linear_out on cat(mix, qp): single (D, 2D) @ (2D, BL) MXU dot.
    comb = jnp.concatenate([acc, qpT], axis=0)              # (2D, BL)
    out = jnp.dot(wout_ref[...], comb, preferred_element_type=jnp.float32)
    out_ref[...] = jnp.tanh(out)


@jax.jit
def attention_forward(query, context, ae, ab, w_in, w_out):
    B, O, D = query.shape
    Q = context.shape[1]
    # Module semantics (ae/ab of shape (116,1,1) broadcasting against mix)
    # require output_len == 1.
    assert O == 1

    BL = 128                                   # lane tile (padded batch width)
    Bp = ((B + BL - 1) // BL) * BL
    pad = Bp - B

    # Layout plumbing in the wrapper: batch goes on the lane dimension.
    qT = jnp.pad(query.reshape(B, D), ((0, pad), (0, 0))).T             # (D, Bp)
    ctxT = jnp.transpose(jnp.pad(context, ((0, pad), (0, 0), (0, 0))),
                         (1, 2, 0))                                      # (Q, D, Bp)
    aeab = jnp.pad(jnp.stack([ae.reshape(-1), ab.reshape(-1)], axis=0),
                   ((0, 0), (0, pad)))                                   # (2, Bp)

    grid = (Bp // BL,)                          # = (1,) for B <= 128
    grid_spec = pltpu.PrefetchScalarGridSpec(
        num_scalar_prefetch=0,
        grid=grid,
        in_specs=[
            pl.BlockSpec((D, BL), lambda i: (0, i)),         # query^T
            pl.BlockSpec((Q, D, BL), lambda i: (0, 0, i)),   # context^T
            pl.BlockSpec((2, BL), lambda i: (0, i)),         # [ae; ab]
            pl.BlockSpec((D, D), lambda i: (0, 0)),          # W_in
            pl.BlockSpec((D, 2 * D), lambda i: (0, 0)),      # W_out
        ],
        out_specs=[
            pl.BlockSpec((D, BL), lambda i: (0, i)),         # output^T
            pl.BlockSpec((Q, BL), lambda i: (0, i)),         # attn weights^T
        ],
    )

    outT, attnT = pl.pallas_call(
        _attention_kernel,
        out_shape=(jax.ShapeDtypeStruct((D, Bp), jnp.float32),
                   jax.ShapeDtypeStruct((Q, Bp), jnp.float32)),
        grid_spec=grid_spec,
        compiler_params=pltpu.CompilerParams(
            dimension_semantics=("arbitrary",)),
    )(qT, ctxT, aeab, w_in, w_out)

    out = outT.T[:B].reshape(B, O, D)
    attn = attnT.T[:B].reshape(B, O, Q)
    return out, attn


def reference_forward(query, context, ae, ab, w_in, w_out):
    """Pure-JAX replica of the PyTorch forward (for verification)."""
    B, O, D = query.shape
    Q = context.shape[1]
    qp = (query.reshape(B * O, D) @ w_in.T).reshape(B, O, D)
    # bmm(qp, context^T) with output_len == 1 is a per-row dot product;
    # computed elementwise so the reference stays on the same f32 path as the
    # kernel (no backend-default matmul-precision ambiguity on the scores).
    scores = jnp.sum(qp[:, :, None, :] * context[:, None, :, :], axis=-1)
    w = jax.nn.softmax(scores, axis=-1)
    mix = w * jnp.transpose(context, (0, 2, 1))
    delta = jnp.flip(jnp.arange(Q, dtype=jnp.float32)).reshape(1, 1, Q)
    decay = jnp.exp(-ab * delta)
    term2 = jax.nn.relu(ae * mix * decay)
    mix_sum = jnp.sum(term2 + mix, axis=-1)[:, None, :]
    combined = jnp.concatenate([mix_sum, qp], axis=2)
    out = jnp.tanh((combined.reshape(B * O, 2 * D) @ w_out.T).reshape(B, O, D))
    return out, w


if __name__ == "__main__":
    # Shapes implied by the module: batch fixed to 116 by the (116,1,1)
    # ae/ab parameters, output_len = 1, small feature dim / query_len.
    B, O, D, Q = 116, 1, 32, 8

    key = jax.random.PRNGKey(0)
    kq, kc, kae, kab, kwi, kwo = jax.random.split(key, 6)

    def bf16_exact(x):
        # Round test data to bf16-representable values so the comparison is
        # insensitive to the backend's default matmul precision path.
        return x.astype(jnp.bfloat16).astype(jnp.float32)

    query = bf16_exact(jax.random.normal(kq, (B, O, D), dtype=jnp.float32))
    context = bf16_exact(jax.random.normal(kc, (B, Q, D), dtype=jnp.float32))

    # torch.FloatTensor(116,1,1) parameters are uninitialized; use small
    # deterministic positive values. Linear weights scaled like torch init.
    ae = 0.1 * jax.random.uniform(kae, (B, 1, 1), dtype=jnp.float32)
    ab = 0.1 * jax.random.uniform(kab, (B, 1, 1), dtype=jnp.float32)
    w_in = bf16_exact(0.1 * jax.random.normal(kwi, (D, D), dtype=jnp.float32))
    w_out = bf16_exact(0.1 * jax.random.normal(kwo, (D, 2 * D), dtype=jnp.float32))

    out, attn = attention_forward(query, context, ae, ab, w_in, w_out)
    jax.block_until_ready((out, attn))

    out_expect, attn_expect = reference_forward(query, context, ae, ab, w_in, w_out)
    assert out.shape == (B, O, D) and attn.shape == (B, O, Q)
    # Softmax is now an exact divide; the remaining tolerance only covers
    # possible matmul precision-path differences (in-kernel MXU vs XLA default)
    # which are orders of magnitude below any semantic error.
    assert jnp.allclose(out, out_expect, atol=5e-3, rtol=5e-3), \
        float(jnp.max(jnp.abs(out - out_expect)))
    assert jnp.allclose(attn, attn_expect, atol=5e-3, rtol=5e-3), \
        float(jnp.max(jnp.abs(attn - attn_expect)))

    print("KERNEL_OK")
</pallas_src>

<mosaic_0001>
module attributes {stable_mosaic.version = 11 : i64} {
  func.func @_attention_kernel(%arg0: i32, %arg1: memref<32x128xf32, #tpu.memory_space<vmem>>, %arg2: memref<8x32x128xf32, #tpu.memory_space<vmem>>, %arg3: memref<2x128xf32, #tpu.memory_space<vmem>>, %arg4: memref<32x32xf32, #tpu.memory_space<vmem>>, %arg5: memref<32x64xf32, #tpu.memory_space<vmem>>, %arg6: memref<32x128xf32, #tpu.memory_space<vmem>>, %arg7: memref<8x128xf32, #tpu.memory_space<vmem>>) attributes {dimension_semantics = [#tpu.dimension_semantics<arbitrary>], iteration_bounds = array<i64: 1>, scalar_prefetch = 0 : i64, scratch_operands = 0 : i64, tpu.core_type = #tpu.core_type<tc>, window_params = [{transform_indices = @transform_0, window_bounds = array<i64: 32, 128>}, {transform_indices = @transform_1, window_bounds = array<i64: 8, 32, 128>}, {transform_indices = @transform_2, window_bounds = array<i64: 2, 128>}, {pipeline_mode = #tpu.pipeline_mode<synchronous>, transform_indices = @transform_3, window_bounds = array<i64: 32, 32>}, {pipeline_mode = #tpu.pipeline_mode<synchronous>, transform_indices = @transform_4, window_bounds = array<i64: 32, 64>}, {transform_indices = @transform_5, window_bounds = array<i64: 32, 128>}, {transform_indices = @transform_6, window_bounds = array<i64: 8, 128>}]} {
    %c0 = arith.constant 0 : index
    %c0_0 = arith.constant 0 : index
    %0 = vector.load %arg1[%c0, %c0_0] : memref<32x128xf32, #tpu.memory_space<vmem>>, vector<32x128xf32>
    %c0_1 = arith.constant 0 : index
    %c0_2 = arith.constant 0 : index
    %1 = vector.load %arg4[%c0_1, %c0_2] : memref<32x32xf32, #tpu.memory_space<vmem>>, vector<32x32xf32>
    %cst = arith.constant dense<0.000000e+00> : vector<32x128xf32>
    %2 = tpu.matmul %1, %0, %cst {dimension_numbers = #tpu.dot_dimension_numbers<[1], [0], [0], [1], [0, 0, 1, 1], [], []>} : vector<32x32xf32>, vector<32x128xf32>, vector<32x128xf32> -> vector<32x128xf32>
    %c0_3 = arith.constant 0 : index
    %c0_4 = arith.constant 0 : index
    %c0_5 = arith.constant 0 : index
    %3 = vector.load %arg2[%c0_3, %c0_4, %c0_5] : memref<8x32x128xf32, #tpu.memory_space<vmem>>, vector<1x32x128xf32>
    %4 = vector.shape_cast %3 : vector<1x32x128xf32> to vector<32x128xf32>
    %5 = arith.mulf %2, %4 : vector<32x128xf32>
    %cst_6 = arith.constant dense<0.000000e+00> : vector<128xf32>
    %6 = vector.multi_reduction <add>, %5, %cst_6 [0] : vector<32x128xf32> to vector<128xf32>
    %7 = vector.shape_cast %6 : vector<128xf32> to vector<1x128xf32>
    %c1 = arith.constant 1 : index
    %c0_7 = arith.constant 0 : index
    %c0_8 = arith.constant 0 : index
    %8 = vector.load %arg2[%c1, %c0_7, %c0_8] : memref<8x32x128xf32, #tpu.memory_space<vmem>>, vector<1x32x128xf32>
    %9 = vector.shape_cast %8 : vector<1x32x128xf32> to vector<32x128xf32>
    %10 = arith.mulf %2, %9 : vector<32x128xf32>
    %cst_9 = arith.constant dense<0.000000e+00> : vector<128xf32>
    %11 = vector.multi_reduction <add>, %10, %cst_9 [0] : vector<32x128xf32> to vector<128xf32>
    %12 = vector.shape_cast %11 : vector<128xf32> to vector<1x128xf32>
    %c2 = arith.constant 2 : index
    %c0_10 = arith.constant 0 : index
    %c0_11 = arith.constant 0 : index
    %13 = vector.load %arg2[%c2, %c0_10, %c0_11] : memref<8x32x128xf32, #tpu.memory_space<vmem>>, vector<1x32x128xf32>
    %14 = vector.shape_cast %13 : vector<1x32x128xf32> to vector<32x128xf32>
    %15 = arith.mulf %2, %14 : vector<32x128xf32>
    %cst_12 = arith.constant dense<0.000000e+00> : vector<128xf32>
    %16 = vector.multi_reduction <add>, %15, %cst_12 [0] : vector<32x128xf32> to vector<128xf32>
    %17 = vector.shape_cast %16 : vector<128xf32> to vector<1x128xf32>
    %c3 = arith.constant 3 : index
    %c0_13 = arith.constant 0 : index
    %c0_14 = arith.constant 0 : index
    %18 = vector.load %arg2[%c3, %c0_13, %c0_14] : memref<8x32x128xf32, #tpu.memory_space<vmem>>, vector<1x32x128xf32>
    %19 = vector.shape_cast %18 : vector<1x32x128xf32> to vector<32x128xf32>
    %20 = arith.mulf %2, %19 : vector<32x128xf32>
    %cst_15 = arith.constant dense<0.000000e+00> : vector<128xf32>
    %21 = vector.multi_reduction <add>, %20, %cst_15 [0] : vector<32x128xf32> to vector<128xf32>
    %22 = vector.shape_cast %21 : vector<128xf32> to vector<1x128xf32>
    %c4 = arith.constant 4 : index
    %c0_16 = arith.constant 0 : index
    %c0_17 = arith.constant 0 : index
    %23 = vector.load %arg2[%c4, %c0_16, %c0_17] : memref<8x32x128xf32, #tpu.memory_space<vmem>>, vector<1x32x128xf32>
    %24 = vector.shape_cast %23 : vector<1x32x128xf32> to vector<32x128xf32>
    %25 = arith.mulf %2, %24 : vector<32x128xf32>
    %cst_18 = arith.constant dense<0.000000e+00> : vector<128xf32>
    %26 = vector.multi_reduction <add>, %25, %cst_18 [0] : vector<32x128xf32> to vector<128xf32>
    %27 = vector.shape_cast %26 : vector<128xf32> to vector<1x128xf32>
    %c5 = arith.constant 5 : index
    %c0_19 = arith.constant 0 : index
    %c0_20 = arith.constant 0 : index
    %28 = vector.load %arg2[%c5, %c0_19, %c0_20] : memref<8x32x128xf32, #tpu.memory_space<vmem>>, vector<1x32x128xf32>
    %29 = vector.shape_cast %28 : vector<1x32x128xf32> to vector<32x128xf32>
    %30 = arith.mulf %2, %29 : vector<32x128xf32>
    %cst_21 = arith.constant dense<0.000000e+00> : vector<128xf32>
    %31 = vector.multi_reduction <add>, %30, %cst_21 [0] : vector<32x128xf32> to vector<128xf32>
    %32 = vector.shape_cast %31 : vector<128xf32> to vector<1x128xf32>
    %c6 = arith.constant 6 : index
    %c0_22 = arith.constant 0 : index
    %c0_23 = arith.constant 0 : index
    %33 = vector.load %arg2[%c6, %c0_22, %c0_23] : memref<8x32x128xf32, #tpu.memory_space<vmem>>, vector<1x32x128xf32>
    %34 = vector.shape_cast %33 : vector<1x32x128xf32> to vector<32x128xf32>
    %35 = arith.mulf %2, %34 : vector<32x128xf32>
    %cst_24 = arith.constant dense<0.000000e+00> : vector<128xf32>
    %36 = vector.multi_reduction <add>, %35, %cst_24 [0] : vector<32x128xf32> to vector<128xf32>
    %37 = vector.shape_cast %36 : vector<128xf32> to vector<1x128xf32>
    %c7 = arith.constant 7 : index
    %c0_25 = arith.constant 0 : index
    %c0_26 = arith.constant 0 : index
    %38 = vector.load %arg2[%c7, %c0_25, %c0_26] : memref<8x32x128xf32, #tpu.memory_space<vmem>>, vector<1x32x128xf32>
    %39 = vector.shape_cast %38 : vector<1x32x128xf32> to vector<32x128xf32>
    %40 = arith.mulf %2, %39 : vector<32x128xf32>
    %cst_27 = arith.constant dense<0.000000e+00> : vector<128xf32>
    %41 = vector.multi_reduction <add>, %40, %cst_27 [0] : vector<32x128xf32> to vector<128xf32>
    %42 = vector.shape_cast %41 : vector<128xf32> to vector<1x128xf32>
    %43 = tpu.concatenate %7, %12, %17, %22, %27, %32, %37, %42 in 0 : vector<1x128xf32>, vector<1x128xf32>, vector<1x128xf32>, vector<1x128xf32>, vector<1x128xf32>, vector<1x128xf32>, vector<1x128xf32>, vector<1x128xf32> -> vector<8x128xf32>
    %cst_28 = arith.constant dense<0xFF800000> : vector<128xf32>
    %44 = vector.multi_reduction <maximumf>, %43, %cst_28 [0] : vector<8x128xf32> to vector<128xf32>
    %45 = vector.shape_cast %44 : vector<128xf32> to vector<1x128xf32>
    %46 = vector.broadcast %45 : vector<1x128xf32> to vector<8x128xf32>
    %47 = arith.subf %43, %46 : vector<8x128xf32>
    %48 = math.exp %47 : vector<8x128xf32>
    %cst_29 = arith.constant dense<0.000000e+00> : vector<128xf32>
    %49 = vector.multi_reduction <add>, %48, %cst_29 [0] : vector<8x128xf32> to vector<128xf32>
    %50 = vector.shape_cast %49 : vector<128xf32> to vector<1x128xf32>
    %51 = vector.broadcast %50 : vector<1x128xf32> to vector<8x128xf32>
    %52 = arith.divf %48, %51 : vector<8x128xf32>
    %c0_30 = arith.constant 0 : index
    %c0_31 = arith.constant 0 : index
    %53 = vector.load %arg7[%c0_30, %c0_31] : memref<8x128xf32, #tpu.memory_space<vmem>>, vector<8x128xf32>
    tpu.vector_store %arg7[%c0_30, %c0_31], %52 {strides = array<i32>} : memref<8x128xf32, #tpu.memory_space<vmem>>, vector<8x128xf32>,
    %c0_32 = arith.constant 0 : index
    %c0_33 = arith.constant 0 : index
    %54 = vector.load %arg3[%c0_32, %c0_33] : memref<2x128xf32, #tpu.memory_space<vmem>>, vector<1x128xf32>
    %c1_34 = arith.constant 1 : index
    %c0_35 = arith.constant 0 : index
    %55 = vector.load %arg3[%c1_34, %c0_35] : memref<2x128xf32, #tpu.memory_space<vmem>>, vector<1x128xf32>
    %56 = tpu.iota {dimensions = array<i32: 0>} : vector<8x128xi32>
    %57 = arith.sitofp %56 : vector<8x128xi32> to vector<8x128xf32>
    %cst_36 = arith.constant 7.000000e+00 : f32
    %58 = vector.broadcast %cst_36 : f32 to vector<8x128xf32>
    %59 = arith.subf %58, %57 : vector<8x128xf32>
    %cst_37 = arith.constant 0.000000e+00 : f32
    %60 = vector.broadcast %cst_37 : f32 to vector<1x128xf32>
    %61 = arith.subf %60, %55 : vector<1x128xf32>
    %62 = vector.broadcast %61 : vector<1x128xf32> to vector<8x128xf32>
    %63 = arith.mulf %62, %59 : vector<8x128xf32>
    %64 = math.exp %63 : vector<8x128xf32>
    %65 = vector.broadcast %54 : vector<1x128xf32> to vector<8x128xf32>
    %66 = arith.mulf %65, %64 : vector<8x128xf32>
    %67 = arith.mulf %66, %52 : vector<8x128xf32>
    %cst_38 = arith.constant 0.000000e+00 : f32
    %68 = vector.broadcast %cst_38 : f32 to vector<32x128xf32>
    %c0_39 = arith.constant 0 : index
    %c0_40 = arith.constant 0 : index
    %c0_41 = arith.constant 0 : index
    %69 = vector.load %arg2[%c0_39, %c0_40, %c0_41] : memref<8x32x128xf32, #tpu.memory_space<vmem>>, vector<1x32x128xf32>
    %70 = vector.shape_cast %69 : vector<1x32x128xf32> to vector<32x128xf32>
    %71 = vector.extract_strided_slice %67 {offsets = [0, 0], sizes = [1, 128], strides = [1, 1]} : vector<8x128xf32> to vector<1x128xf32>
    %72 = vector.broadcast %71 : vector<1x128xf32> to vector<32x128xf32>
    %73 = arith.mulf %72, %70 : vector<32x128xf32>
    %cst_42 = arith.constant 0.000000e+00 : f32
    %74 = vector.broadcast %cst_42 : f32 to vector<32x128xf32>
    %75 = arith.maximumf %73, %74 : vector<32x128xf32>
    %76 = arith.addf %68, %75 : vector<32x128xf32>
    %77 = vector.extract_strided_slice %52 {offsets = [0, 0], sizes = [1, 128], strides = [1, 1]} : vector<8x128xf32> to vector<1x128xf32>
    %78 = vector.broadcast %77 : vector<1x128xf32> to vector<32x128xf32>
    %79 = arith.mulf %78, %70 : vector<32x128xf32>
    %80 = arith.addf %76, %79 : vector<32x128xf32>
    %c1_43 = arith.constant 1 : index
    %c0_44 = arith.constant 0 : index
    %c0_45 = arith.constant 0 : index
    %81 = vector.load %arg2[%c1_43, %c0_44, %c0_45] : memref<8x32x128xf32, #tpu.memory_space<vmem>>, vector<1x32x128xf32>
    %82 = vector.shape_cast %81 : vector<1x32x128xf32> to vector<32x128xf32>
    %83 = vector.extract_strided_slice %67 {offsets = [1, 0], sizes = [1, 128], strides = [1, 1]} : vector<8x128xf32> to vector<1x128xf32>
    %84 = vector.broadcast %83 : vector<1x128xf32> to vector<32x128xf32>
    %85 = arith.mulf %84, %82 : vector<32x128xf32>
    %cst_46 = arith.constant 0.000000e+00 : f32
    %86 = vector.broadcast %cst_46 : f32 to vector<32x128xf32>
    %87 = arith.maximumf %85, %86 : vector<32x128xf32>
    %88 = arith.addf %80, %87 : vector<32x128xf32>
    %89 = vector.extract_strided_slice %52 {offsets = [1, 0], sizes = [1, 128], strides = [1, 1]} : vector<8x128xf32> to vector<1x128xf32>
    %90 = vector.broadcast %89 : vector<1x128xf32> to vector<32x128xf32>
    %91 = arith.mulf %90, %82 : vector<32x128xf32>
    %92 = arith.addf %88, %91 : vector<32x128xf32>
    %c2_47 = arith.constant 2 : index
    %c0_48 = arith.constant 0 : index
    %c0_49 = arith.constant 0 : index
    %93 = vector.load %arg2[%c2_47, %c0_48, %c0_49] : memref<8x32x128xf32, #tpu.memory_space<vmem>>, vector<1x32x128xf32>
    %94 = vector.shape_cast %93 : vector<1x32x128xf32> to vector<32x128xf32>
    %95 = vector.extract_strided_slice %67 {offsets = [2, 0], sizes = [1, 128], strides = [1, 1]} : vector<8x128xf32> to vector<1x128xf32>
    %96 = vector.broadcast %95 : vector<1x128xf32> to vector<32x128xf32>
    %97 = arith.mulf %96, %94 : vector<32x128xf32>
    %cst_50 = arith.constant 0.000000e+00 : f32
    %98 = vector.broadcast %cst_50 : f32 to vector<32x128xf32>
    %99 = arith.maximumf %97, %98 : vector<32x128xf32>
    %100 = arith.addf %92, %99 : vector<32x128xf32>
    %101 = vector.extract_strided_slice %52 {offsets = [2, 0], sizes = [1, 128], strides = [1, 1]} : vector<8x128xf32> to vector<1x128xf32>
    %102 = vector.broadcast %101 : vector<1x128xf32> to vector<32x128xf32>
    %103 = arith.mulf %102, %94 : vector<32x128xf32>
    %104 = arith.addf %100, %103 : vector<32x128xf32>
    %c3_51 = arith.constant 3 : index
    %c0_52 = arith.constant 0 : index
    %c0_53 = arith.constant 0 : index
    %105 = vector.load %arg2[%c3_51, %c0_52, %c0_53] : memref<8x32x128xf32, #tpu.memory_space<vmem>>, vector<1x32x128xf32>
    %106 = vector.shape_cast %105 : vector<1x32x128xf32> to vector<32x128xf32>
    %107 = vector.extract_strided_slice %67 {offsets = [3, 0], sizes = [1, 128], strides = [1, 1]} : vector<8x128xf32> to vector<1x128xf32>
    %108 = vector.broadcast %107 : vector<1x128xf32> to vector<32x128xf32>
    %109 = arith.mulf %108, %106 : vector<32x128xf32>
    %cst_54 = arith.constant 0.000000e+00 : f32
    %110 = vector.broadcast %cst_54 : f32 to vector<32x128xf32>
    %111 = arith.maximumf %109, %110 : vector<32x128xf32>
    %112 = arith.addf %104, %111 : vector<32x128xf32>
    %113 = vector.extract_strided_slice %52 {offsets = [3, 0], sizes = [1, 128], strides = [1, 1]} : vector<8x128xf32> to vector<1x128xf32>
    %114 = vector.broadcast %113 : vector<1x128xf32> to vector<32x128xf32>
    %115 = arith.mulf %114, %106 : vector<32x128xf32>
    %116 = arith.addf %112, %115 : vector<32x128xf32>
    %c4_55 = arith.constant 4 : index
    %c0_56 = arith.constant 0 : index
    %c0_57 = arith.constant 0 : index
    %117 = vector.load %arg2[%c4_55, %c0_56, %c0_57] : memref<8x32x128xf32, #tpu.memory_space<vmem>>, vector<1x32x128xf32>
    %118 = vector.shape_cast %117 : vector<1x32x128xf32> to vector<32x128xf32>
    %119 = vector.extract_strided_slice %67 {offsets = [4, 0], sizes = [1, 128], strides = [1, 1]} : vector<8x128xf32> to vector<1x128xf32>
    %120 = vector.broadcast %119 : vector<1x128xf32> to vector<32x128xf32>
    %121 = arith.mulf %120, %118 : vector<32x128xf32>
    %cst_58 = arith.constant 0.000000e+00 : f32
    %122 = vector.broadcast %cst_58 : f32 to vector<32x128xf32>
    %123 = arith.maximumf %121, %122 : vector<32x128xf32>
    %124 = arith.addf %116, %123 : vector<32x128xf32>
    %125 = vector.extract_strided_slice %52 {offsets = [4, 0], sizes = [1, 128], strides = [1, 1]} : vector<8x128xf32> to vector<1x128xf32>
    %126 = vector.broadcast %125 : vector<1x128xf32> to vector<32x128xf32>
    %127 = arith.mulf %126, %118 : vector<32x128xf32>
    %128 = arith.addf %124, %127 : vector<32x128xf32>
    %c5_59 = arith.constant 5 : index
    %c0_60 = arith.constant 0 : index
    %c0_61 = arith.constant 0 : index
    %129 = vector.load %arg2[%c5_59, %c0_60, %c0_61] : memref<8x32x128xf32, #tpu.memory_space<vmem>>, vector<1x32x128xf32>
    %130 = vector.shape_cast %129 : vector<1x32x128xf32> to vector<32x128xf32>
    %131 = vector.extract_strided_slice %67 {offsets = [5, 0], sizes = [1, 128], strides = [1, 1]} : vector<8x128xf32> to vector<1x128xf32>
    %132 = vector.broadcast %131 : vector<1x128xf32> to vector<32x128xf32>
    %133 = arith.mulf %132, %130 : vector<32x128xf32>
    %cst_62 = arith.constant 0.000000e+00 : f32
    %134 = vector.broadcast %cst_62 : f32 to vector<32x128xf32>
    %135 = arith.maximumf %133, %134 : vector<32x128xf32>
    %136 = arith.addf %128, %135 : vector<32x128xf32>
    %137 = vector.extract_strided_slice %52 {offsets = [5, 0], sizes = [1, 128], strides = [1, 1]} : vector<8x128xf32> to vector<1x128xf32>
    %138 = vector.broadcast %137 : vector<1x128xf32> to vector<32x128xf32>
    %139 = arith.mulf %138, %130 : vector<32x128xf32>
    %140 = arith.addf %136, %139 : vector<32x128xf32>
    %c6_63 = arith.constant 6 : index
    %c0_64 = arith.constant 0 : index
    %c0_65 = arith.constant 0 : index
    %141 = vector.load %arg2[%c6_63, %c0_64, %c0_65] : memref<8x32x128xf32, #tpu.memory_space<vmem>>, vector<1x32x128xf32>
    %142 = vector.shape_cast %141 : vector<1x32x128xf32> to vector<32x128xf32>
    %143 = vector.extract_strided_slice %67 {offsets = [6, 0], sizes = [1, 128], strides = [1, 1]} : vector<8x128xf32> to vector<1x128xf32>
    %144 = vector.broadcast %143 : vector<1x128xf32> to vector<32x128xf32>
    %145 = arith.mulf %144, %142 : vector<32x128xf32>
    %cst_66 = arith.constant 0.000000e+00 : f32
    %146 = vector.broadcast %cst_66 : f32 to vector<32x128xf32>
    %147 = arith.maximumf %145, %146 : vector<32x128xf32>
    %148 = arith.addf %140, %147 : vector<32x128xf32>
    %149 = vector.extract_strided_slice %52 {offsets = [6, 0], sizes = [1, 128], strides = [1, 1]} : vector<8x128xf32> to vector<1x128xf32>
    %150 = vector.broadcast %149 : vector<1x128xf32> to vector<32x128xf32>
    %151 = arith.mulf %150, %142 : vector<32x128xf32>
    %152 = arith.addf %148, %151 : vector<32x128xf32>
    %c7_67 = arith.constant 7 : index
    %c0_68 = arith.constant 0 : index
    %c0_69 = arith.constant 0 : index
    %153 = vector.load %arg2[%c7_67, %c0_68, %c0_69] : memref<8x32x128xf32, #tpu.memory_space<vmem>>, vector<1x32x128xf32>
    %154 = vector.shape_cast %153 : vector<1x32x128xf32> to vector<32x128xf32>
    %155 = vector.extract_strided_slice %67 {offsets = [7, 0], sizes = [1, 128], strides = [1, 1]} : vector<8x128xf32> to vector<1x128xf32>
    %156 = vector.broadcast %155 : vector<1x128xf32> to vector<32x128xf32>
    %157 = arith.mulf %156, %154 : vector<32x128xf32>
    %cst_70 = arith.constant 0.000000e+00 : f32
    %158 = vector.broadcast %cst_70 : f32 to vector<32x128xf32>
    %159 = arith.maximumf %157, %158 : vector<32x128xf32>
    %160 = arith.addf %152, %159 : vector<32x128xf32>
    %161 = vector.extract_strided_slice %52 {offsets = [7, 0], sizes = [1, 128], strides = [1, 1]} : vector<8x128xf32> to vector<1x128xf32>
    %162 = vector.broadcast %161 : vector<1x128xf32> to vector<32x128xf32>
    %163 = arith.mulf %162, %154 : vector<32x128xf32>
    %164 = arith.addf %160, %163 : vector<32x128xf32>
    %165 = tpu.concatenate %164, %2 in 0 : vector<32x128xf32>, vector<32x128xf32> -> vector<64x128xf32>
    %c0_71 = arith.constant 0 : index
    %c0_72 = arith.constant 0 : index
    %166 = vector.load %arg5[%c0_71, %c0_72] : memref<32x64xf32, #tpu.memory_space<vmem>>, vector<32x64xf32>
    %cst_73 = arith.constant dense<0.000000e+00> : vector<32x128xf32>
    %167 = tpu.matmul %166, %165, %cst_73 {dimension_numbers = #tpu.dot_dimension_numbers<[1], [0], [0], [1], [0, 0, 1, 1], [], []>} : vector<32x64xf32>, vector<64x128xf32>, vector<32x128xf32> -> vector<32x128xf32>
    %168 = math.tanh %167 : vector<32x128xf32>
    %c0_74 = arith.constant 0 : index
    %c0_75 = arith.constant 0 : index
    %169 = vector.load %arg6[%c0_74, %c0_75] : memref<32x128xf32, #tpu.memory_space<vmem>>, vector<32x128xf32>
    tpu.vector_store %arg6[%c0_74, %c0_75], %168 {strides = array<i32>} : memref<32x128xf32, #tpu.memory_space<vmem>>, vector<32x128xf32>,
    return
  }
  func.func @transform_0(%arg0: i32) -> (i32, i32) {
    %c0_i32 = arith.constant 0 : i32
    %c0_i32_0 = arith.constant 0 : i32
    return %c0_i32, %arg0 : i32, i32
  }
  func.func @transform_1(%arg0: i32) -> (i32, i32, i32) {
    %c0_i32 = arith.constant 0 : i32
    %c0_i32_0 = arith.constant 0 : i32
    %c0_i32_1 = arith.constant 0 : i32
    return %c0_i32, %c0_i32_0, %arg0 : i32, i32, i32
  }
  func.func @transform_2(%arg0: i32) -> (i32, i32) {
    %c0_i32 = arith.constant 0 : i32
    %c0_i32_0 = arith.constant 0 : i32
    return %c0_i32, %arg0 : i32, i32
  }
  func.func @transform_3(%arg0: i32) -> (i32, i32) {
    %c0_i32 = arith.constant 0 : i32
    %c0_i32_0 = arith.constant 0 : i32
    %c0_i32_1 = arith.constant 0 : i32
    return %c0_i32, %c0_i32_0 : i32, i32
  }
  func.func @transform_4(%arg0: i32) -> (i32, i32) {
    %c0_i32 = arith.constant 0 : i32
    %c0_i32_0 = arith.constant 0 : i32
    %c0_i32_1 = arith.constant 0 : i32
    return %c0_i32, %c0_i32_0 : i32, i32
  }
  func.func @transform_5(%arg0: i32) -> (i32, i32) {
    %c0_i32 = arith.constant 0 : i32
    %c0_i32_0 = arith.constant 0 : i32
    return %c0_i32, %arg0 : i32, i32
  }
  func.func @transform_6(%arg0: i32) -> (i32, i32) {
    %c0_i32 = arith.constant 0 : i32
    %c0_i32_0 = arith.constant 0 : i32
    return %c0_i32, %arg0 : i32, i32
  }
}

</mosaic_0001>

<bundles_post_ra>
// kernel: attention_forward.1
= control target key start
LH: loop header
LB: loop body
LE: loop exit
PB: predicated region body
PF: predicated region fallthrough
CT: control target
= control target key end

     0   :  { %vm30_vm0 = vcmask 261120   ;;  %vm271_vm1 = vcmask 1040384   ;;  %vm273_vm2 = vcmask 1041408   ;;  %vm275_vm3 = vcmask 1042432   ;;  %s1406_s0 = inlined_call_operand.vmem [shape: f32[32,128], index: 0, kind: input, shape index: {}]   ;;  %s1407_s3 = inlined_call_operand.vmem [shape: f32[32,32], index: 3, kind: input, shape index: {}]   ;;  %s1408_s1 = inlined_call_operand.vmem [shape: f32[8,32,128], index: 1, kind: input, shape index: {}]   ;;  %s1409_s4 = inlined_call_operand.vmem [shape: f32[32,64], index: 4, kind: input, shape index: {}]   ;;  %s1410_s2 = inlined_call_operand.vmem [shape: f32[2,128], index: 2, kind: input, shape index: {}]   ;;  %s1411_s6 = inlined_call_operand.vmem [shape: f32[8,128], index: 6, kind: output, shape index: {1}]   ;;  %s1412_s5 = inlined_call_operand.vmem [shape: f32[32,128], index: 5, kind: output, shape index: {0}]  }
   0x1   :  { %v22_v0 = vld [vmem:[%s1406_s0] sm:$0xff]  ;;  %v23_v1 = vld [vmem:[%s1406_s0 + $0x8] sm:$0xff]  ;;  %v24_v2 = vld [vmem:[%s1406_s0 + $0x10] sm:$0xff]  ;;  %vm277_vm4 = vcmask 1043456   ;;  %vm279_vm5 = vcmask 1044480   ;;  %vm281_vm6 = vcmask 1045504  }
   0x2   :  { %v818_v3 = vpack.c.bf16 %v23_v1, %v22_v0  ;;  %v25_v4 = vld [vmem:[%s1406_s0 + $0x18] sm:$0xff]  ;;  %v26_v5 = vld [vmem:[%s1407_s3] sm:$0xff]  ;;  %v27_v7 = vld [vmem:[%s1407_s3 + $0x8] sm:$0xff]  ;;  %vm583_vm7 = vcmask 523264   ;;  %vm283_vm8 = vcmask 1046528  }
   0x3   :  { %v822_v6 = vpack.c.bf16 %v25_v4, %v24_v2  ;;  %790 = vmatprep.mubr.msk.f32.mxu0 %vm30_vm0, %v26_v5  ;;  %v28_v8 = vld [vmem:[%s1407_s3 + $0x10] sm:$0xff]  ;;  %v29_v9 = vld [vmem:[%s1407_s3 + $0x18] sm:$0xff]  ;;  %v922_v10 = vld [vmem:[%s1408_s1 + $0x8] sm:$0xff] }
   0x4   :  { %819 = vmatprep.subr.bf16.mxu0 %v818_v3  ;;  %v927_v11 = vld [vmem:[%s1408_s1 + $0x28] sm:$0xff]  ;;  %v962_v18 = vld [vmem:[%s1408_s1] sm:$0xff]  ;;  %v1014_v32 = vld [vmem:[%s1408_s1 + $0x18] sm:$0xff] }
   0x5   :  { %821 = vmatpush3.bf16.msra.mxu0 %v818_v3  ;;  %v932_v12 = vld [vmem:[%s1408_s1 + $0x48] sm:$0xff]  ;;  %v967_v19 = vld [vmem:[%s1408_s1 + $0x20] sm:$0xff]  ;;  %v1019_v33 = vld [vmem:[%s1408_s1 + $0x38] sm:$0xff] }
   0x6   :  { %823 = vmatprep.subr.bf16.mxu0 %v822_v6  ;;  %v937_v13 = vld [vmem:[%s1408_s1 + $0x68] sm:$0xff]  ;;  %v972_v20 = vld [vmem:[%s1408_s1 + $0x40] sm:$0xff]  ;;  %v1034_v38 = vld [vmem:[%s1408_s1 + $0x58] sm:$0xff] }
   0x7   :  { %v942_v14 = vld [vmem:[%s1408_s1 + $0x88] sm:$0xff]  ;;  %v977_v21 = vld [vmem:[%s1408_s1 + $0x60] sm:$0xff]  ;;  %1429 = vst [vmem:[#allocation2_spill] sm:$0xff] %v1034_v38  ;;  %v1039_v39 = vld [vmem:[%s1408_s1 + $0x78] sm:$0xff] }
   0x8   :  { %v947_v15 = vld [vmem:[%s1408_s1 + $0xa8] sm:$0xff]  ;;  %v984_v23 = vld [vmem:[%s1408_s1 + $0x80] sm:$0xff]  ;;  %1430 = vst [vmem:[#allocation3_spill] sm:$0xff] %v1039_v39  ;;  %v1044_v40 = vld [vmem:[%s1408_s1 + $0x98] sm:$0xff] }
   0x9   :  { %825 = vmatpush3.bf16.msra.mxu0 %v822_v6  ;;  %v952_v16 = vld [vmem:[%s1408_s1 + $0xc8] sm:$0xff]  ;;  %v989_v24 = vld [vmem:[%s1408_s1 + $0xa0] sm:$0xff]  ;;  %1431 = vst [vmem:[#allocation4_spill] sm:$0xff] %v1044_v40  ;;  %v1057_v45 = vld [vmem:[%s1408_s1 + $0xb8] sm:$0xff] }
   0xa   :  { %v957_v17 = vld [vmem:[%s1408_s1 + $0xe8] sm:$0xff]  ;;  %v994_v25 = vld [vmem:[%s1408_s1 + $0xc0] sm:$0xff]  ;;  %1432 = vst [vmem:[#allocation5_spill] sm:$0xff] %v1057_v45  ;;  %v1062_v46 = vld [vmem:[%s1408_s1 + $0xd8] sm:$0xff] }
   0xb   :  { %v1009_v31 = vld [vmem:[%s1408_s1 + $0xe0] sm:$0xff]  ;;  %1433 = vst [vmem:[#allocation6_spill] sm:$0xff] %v1062_v46  ;;  %v1067_v47 = vld [vmem:[%s1408_s1 + $0xf8] sm:$0xff]  ;;  %v1082_v53 = vld [vmem:[%s1408_s1 + $0x10] sm:$0xff] }
   0xc   :  { %791 = vmatmul.mubr.msk.f32.vlgmr.msra.gmra.mrb[0].mxu0 %vm30_vm0, %v27_v7  ;;  %1434 = vst [vmem:[#allocation7_spill] sm:$0xff] %v1067_v47  ;;  %v1087_v54 = vld [vmem:[%s1408_s1 + $0x30] sm:$0xff] }
   0xd   :  { %793 = vmatprep.mubr.msk.f32.mxu0 %vm30_vm0, %v28_v8  ;;  %v1102_v60 = vld [vmem:[%s1408_s1 + $0x50] sm:$0xff] }
   0xe   :  { %v1107_v61 = vld [vmem:[%s1408_s1 + $0x70] sm:$0xff] }
   0xf   :  { %1435 = vst [vmem:[#allocation8_spill] sm:$0xff] %v1107_v61  ;;  %v1120_v2 = vld [vmem:[%s1408_s1 + $0x90] sm:$0xff] }
  0x10   :  { %794 = vmatmul.mubr.msk.f32.gmra.mrb[2].mxu0 %vm30_vm0, %v29_v9  ;;  %v1129_v7 = vld [vmem:[%s1408_s1 + $0xb0] sm:$0xff] }
  0x11   :  { %1436 = vst [vmem:[#allocation9_spill] sm:$0xff] %v1129_v7 }
  0xdf   :  { %v979_v22 = vpop.f32.mrb[0].mxu0 }
  0xe0   :  { %v133_v26 = vmul.f32 %v979_v22, %v922_v10  ;;  %v151_v27 = vmul.f32 %v979_v22, %v927_v11  ;;  %v169_v28 = vmul.f32 %v979_v22, %v932_v12  ;;  %v187_v29 = vmul.f32 %v979_v22, %v937_v13  ;;  %v1004_v30 = vpop.f32.mrb[1].mxu0 }
  0xe1   :  { %v205_v34 = vmul.f32 %v979_v22, %v942_v14  ;;  %v223_v35 = vmul.f32 %v979_v22, %v947_v15  ;;  %v241_v36 = vmul.f32 %v979_v22, %v952_v16  ;;  %v1029_v37 = vmul.f32 %v979_v22, %v957_v17 }
  0xe2   :  { %v132_v41 = vmul.f32 %v962_v18, %v1004_v30  ;;  %v150_v42 = vmul.f32 %v967_v19, %v1004_v30  ;;  %v168_v43 = vmul.f32 %v972_v20, %v1004_v30  ;;  %v186_v44 = vmul.f32 %v977_v21, %v1004_v30 }
  0xe3   :  { %v204_v48 = vmul.f32 %v984_v23, %v1004_v30  ;;  %v222_v49 = vmul.f32 %v989_v24, %v1004_v30  ;;  %v240_v50 = vmul.f32 %v994_v25, %v1004_v30  ;;  %v258_v51 = vmul.f32 %v1009_v31, %v1004_v30  ;;  %v1077_v52 = vpop.f32.mrb[2].mxu0 }
  0xe4   :  { %v135_v55 = vmul.f32 %v1077_v52, %v1014_v32  ;;  %v153_v56 = vmul.f32 %v1077_v52, %v1019_v33  ;;  %v171_v57 = vmul.f32 %v1077_v52, %v1034_v38  ;;  %v189_v58 = vmul.f32 %v1077_v52, %v1039_v39  ;;  %v1097_v59 = vpop.f32.mrb[3].mxu0 }
  0xe5   :  { %v207_v62 = vmul.f32 %v1077_v52, %v1044_v40  ;;  %v225_v63 = vmul.f32 %v1077_v52, %v1057_v45  ;;  %v243_v0 = vmul.f32 %v1077_v52, %v1062_v46  ;;  %v261_v1 = vmul.f32 %v1077_v52, %v1067_v47 }
  0xe6   :  { %v134_v3 = vmul.f32 %v1082_v53, %v1097_v59  ;;  %v136_v4 = vadd.f32 %v133_v26, %v132_v41  ;;  %v152_v5 = vmul.f32 %v1087_v54, %v1097_v59  ;;  %v154_v6 = vadd.f32 %v151_v27, %v150_v42  ;;  %v1138_v26 = vld [vmem:[%s1408_s1 + $0xd0] sm:$0xff] }
  0xe7   :  { %v170_v8 = vmul.f32 %v1102_v60, %v1097_v59  ;;  %v172_v9 = vadd.f32 %v169_v28, %v168_v43  ;;  %v188_v47 = vmul.f32 %v1107_v61, %v1097_v59  ;;  %v190_v46 = vadd.f32 %v187_v29, %v186_v44  ;;  %v1147_v29 = vld [vmem:[%s1408_s1 + $0xf0] sm:$0xff] }
  0xe8   :  { %v137_v41 = vadd.f32 %v136_v4, %v134_v3  ;;  %v155_v27 = vadd.f32 %v154_v6, %v152_v5  ;;  %v206_v42 = vmul.f32 %v1120_v2, %v1097_v59  ;;  %v208_v45 = vadd.f32 %v205_v34, %v204_v48 }
  0xe9   :  { %v173_v40 = vadd.f32 %v172_v9, %v170_v8  ;;  %v191_v39 = vadd.f32 %v190_v46, %v188_v47  ;;  %v224_v28 = vmul.f32 %v1129_v7, %v1097_v59  ;;  %v226_v43 = vadd.f32 %v223_v35, %v222_v49 }
  0xea   :  { %v138_v44 = vadd.f32 %v137_v41, %v135_v55  ;;  %v156_v61 = vadd.f32 %v155_v27, %v153_v56  ;;  %v209_v38 = vadd.f32 %v208_v45, %v206_v42  ;;  %v242_v3 = vmul.f32 %v1138_v26, %v1097_v59 }
  0xeb   :  { %v174_v4 = vadd.f32 %v173_v40, %v171_v57  ;;  %v192_v5 = vadd.f32 %v191_v39, %v189_v58  ;;  %v227_v34 = vadd.f32 %v226_v43, %v224_v28  ;;  %v244_v48 = vadd.f32 %v241_v36, %v240_v50 }
  0xec   :  { %v139_v46 = vrot.slane %v138_v44, 4  ;;  %v157_v47 = vrot.slane %v156_v61, 4  ;;  %v210_v6 = vadd.f32 %v209_v38, %v207_v62  ;;  %v260_v35 = vmul.f32 %v1147_v29, %v1097_v59 }
  0xed   :  { %v175_v49 = vrot.slane %v174_v4, 4  ;;  %v193_v8 = vrot.slane %v192_v5, 4  ;;  %v228_v9 = vadd.f32 %v227_v34, %v225_v63  ;;  %v245_v7 = vadd.f32 %v244_v48, %v242_v3 }
  0xee   :  { %v140_v55 = vadd.f32 %v139_v46, %v138_v44  ;;  %v158_v45 = vadd.f32 %v157_v47, %v156_v61  ;;  %v211_v56 = vrot.slane %v210_v6, 4  ;;  %v262_v41 = vadd.f32 %v1029_v37, %v258_v51 }
  0xef   :  { %v176_v39 = vadd.f32 %v175_v49, %v174_v4  ;;  %v194_v40 = vadd.f32 %v193_v8, %v192_v5  ;;  %v229_v36 = vrot.slane %v228_v9, 4  ;;  %v246_v50 = vadd.f32 %v245_v7, %v243_v0 }
  0xf0   :  { %v141_v38 = vrot.slane %v140_v55, 2  ;;  %v159_v57 = vrot.slane %v158_v45, 2  ;;  %v212_v58 = vadd.f32 %v211_v56, %v210_v6  ;;  %v263_v62 = vadd.f32 %v262_v41, %v260_v35 }
  0xf1   :  { %v177_v27 = vrot.slane %v176_v39, 2  ;;  %v195_v63 = vrot.slane %v194_v40, 2  ;;  %v230_v42 = vadd.f32 %v229_v36, %v228_v9  ;;  %v247_v28 = vrot.slane %v246_v50, 4 }
  0xf2   :  { %v142_v61 = vadd.f32 %v141_v38, %v140_v55  ;;  %v160_v43 = vadd.f32 %v159_v57, %v158_v45  ;;  %v213_v44 = vrot.slane %v212_v58, 2  ;;  %v264_v37 = vadd.f32 %v263_v62, %v261_v1 }
  0xf3   :  { %v178_v51 = vadd.f32 %v177_v27, %v176_v39  ;;  %v196_v3 = vadd.f32 %v195_v63, %v194_v40  ;;  %v231_v4 = vrot.slane %v230_v42, 2  ;;  %v248_v5 = vadd.f32 %v247_v28, %v246_v50  ;;  %v579_v50 = vld [vmem:[%s1409_s4] sm:$0xff] }
  0xf4   :  { %v143_v0 = vrot.slane %v142_v61, 1  ;;  %v161_v7 = vrot.slane %v160_v43, 1  ;;  %v214_v34 = vadd.f32 %v213_v44, %v212_v58  ;;  %v265_v48 = vrot.slane %v264_v37, 4  ;;  %812 = vmatprep.mubr.msk.f32.mxu1 %vm583_vm7, %v579_v50 }
  0xf5   :  { %v179_v46 = vrot.slane %v178_v51, 1  ;;  %v197_v47 = vrot.slane %v196_v3, 1  ;;  %v232_v6 = vadd.f32 %v231_v4, %v230_v42  ;;  %v249_v35 = vrot.slane %v248_v5, 2 }
  0xf6   :  { %v144_v49 = vadd.f32 %v143_v0, %v142_v61  ;;  %v162_v8 = vadd.f32 %v161_v7, %v160_v43  ;;  %v215_v9 = vrot.slane %v214_v34, 1  ;;  %v266_v56 = vadd.f32 %v265_v48, %v264_v37 }
  0xf7   :  { %v180_v55 = vadd.f32 %v179_v46, %v178_v51  ;;  %v233_v45 = vrot.slane %v232_v6, 1  ;;  %v250_v41 = vadd.f32 %v249_v35, %v248_v5  ;;  %v198_v1 = vadd.f32 %v197_v47, %v196_v3  ;;  %v304_v46 = vld [vmem:[%s1410_s2 + $0x1] sm:$0x1] }
  0xf8   :  { %v267_v39 = vrot.slane %v266_v56, 2  ;;  %v272_v40 = vsel %vm271_vm1, %v144_v49, %v162_v8  ;;  %v1157_v36 = vpack.c.bf16 %v979_v22, %v1004_v30  ;;  %v216_v38 = vadd.f32 %v215_v9, %v214_v34 }
  0xf9   :  { %v251_v57 = vrot.slane %v250_v41, 1  ;;  %v274_v58 = vsel %vm273_vm2, %v272_v40, %v180_v55  ;;  %v1165_v62 = vpack.c.bf16 %v1077_v52, %v1097_v59  ;;  %v234_v27 = vadd.f32 %v233_v45, %v232_v6 }
  0xfa   :  { %v268_v63 = vadd.f32 %v267_v39, %v266_v56  ;;  %v276_v42 = vsel %vm275_vm3, %v274_v58, %v198_v1  ;;  %v305_v0 = vlaneseq  ;;  %v309_v6 = vsub.f32 0.0, %v304_v46 }
  0xfb   :  { %v252_v28 = vadd.f32 %v251_v57, %v250_v41  ;;  %v278_v22 = vsel %vm277_vm4, %v276_v42, %v216_v38  ;;  %v729_v57 = vld [vmem:[%s1410_s2] ss:$0 sm:$0xff] }
  0xfc   :  { %v269_v30 = vrot.slane %v268_v63, 1  ;;  %v280_v61 = vsel %vm279_vm5, %v278_v22, %v234_v27  ;;  %v1172_v48 = vshrl.u32 %v305_v0, 7 }
  0xfd   :  { %v282_v43 = vsel %vm281_vm6, %v280_v61, %v252_v28 }
  0xfe   :  { %v270_v44 = vadd.f32 %v269_v30, %v268_v63  ;;  %v307_v47 = vcvt.s32.f32 %v1172_v48  ;;  %v312_v35 = vsub.s32 0, %v1172_v48  ;;  %v361_v42 = vsub.s32 1, %v1172_v48 }
  0xff   :  { %v393_v28 = vsub.s32 2, %v1172_v48  ;;  %v425_v22 = vsub.s32 3, %v1172_v48  ;;  %v457_v30 = vsub.s32 4, %v1172_v48 }
 0x100   :  { %v284_v37 = vsel %vm283_vm8, %v282_v43, %v270_v44  ;;  %v308_v49 = vsub.f32 7.0, %v307_v47  ;;  %v313_v8 = vrot.slane %v309_v6, %v312_v35  ;;  %v489_v44 = vsub.s32 5, %v1172_v48 }
 0x101   :  { %v285_v52 = vrot.slane %v284_v37, 4 }
 0x102   :  { %v314_v55 = vmul.f32 %v313_v8, %v308_v49 }
 0x103   :  { %v286_v59 = vmax.f32 %v284_v37, %v285_v52 }
 0x104   :  { %v315_v1 = vmul.f32 1.442695, %v314_v55 }
 0x105   :  { %v287_v51 = vrot.slane %v286_v59, 2 }
 0x107   :  { %v288_v3 = vmax.f32 %v286_v59, %v287_v51 }
 0x109   :  { %v289_v4 = vrot.slane %v288_v3, 1 }
 0x10b   :  { %v290_v5 = vmax.f32 %v288_v3, %v289_v4  ;;  %v553_v3 = vsub.s32 7, %v1172_v48 }
 0x10d   :  { %v291_v7 = vsub.f32 %v284_v37, %v290_v5  ;;  %v521_v37 = vsub.s32 6, %v1172_v48 }
 0x10f   :  { %v292_v34 = vmul.f32 1.442695, %v291_v7 }
 0x111   :  { %842 = vpow2.f32 %v292_v34 }
 0x112   :  { %844 = vpow2.f32 %v315_v1 }
 0x11b   :  { %v843_v9 = vpop.eup %842 }
 0x11c   :  { %v294_v56 = vrot.slane %v843_v9, 4  ;;  %v845_v38 = vpop.eup %844 }
 0x11d   :  { %v321_v58 = vmul.f32 %v845_v38, %v729_v57 }
 0x11e   :  { %v295_v45 = vadd.f32 %v843_v9, %v294_v56 }
 0x120   :  { %v296_v41 = vrot.slane %v295_v45, 2 }
 0x122   :  { %v297_v39 = vadd.f32 %v296_v41, %v295_v45 }
 0x124   :  { %v298_v40 = vrot.slane %v297_v39, 1 }
 0x126   :  { %v299_v50 = vadd.f32 %v298_v40, %v297_v39 }
 0x128   :  { %846 = vrcp.f32 %v299_v50 }
 0x132   :  { %v847_v27 = vpop.eup %846 }
 0x133   :  { %v1182_v63 = vmul.f32 %v847_v27, %v843_v9 }
 0x135   :  { %302 = vst [vmem:[%s1411_s6] sm:$0xff] %v1182_v63  ;;  %v1193_v61 = vmul.f32 %v321_v58, %v1182_v63  ;;  %v1196_v43 = vrot.slane %v1182_v63, %v312_v35  ;;  %v1207_v51 = vrot.slane %v1182_v63, %v361_v42  ;;  %v1214_v5 = vrot.slane %v1182_v63, %v393_v28 }
 0x136   :  { %v1217_v0 = vrot.slane %v1182_v63, %v425_v22  ;;  %v1220_v7 = vrot.slane %v1182_v63, %v457_v30  ;;  %v1236_v8 = vrot.slane %v1182_v63, %v489_v44  ;;  %v1239_v9 = vrot.slane %v1182_v63, %v521_v37 }
 0x137   :  { %v1201_v52 = vrot.slane %v1193_v61, %v312_v35  ;;  %v1204_v59 = vrot.slane %v1193_v61, %v361_v42  ;;  %v1211_v4 = vrot.slane %v1193_v61, %v393_v28  ;;  %v347_v35 = vmul.f32 %v1196_v43, %v962_v18 }
 0x138   :  { %v1233_v49 = vrot.slane %v1193_v61, %v425_v22  ;;  %v348_v45 = vmul.f32 %v1196_v43, %v922_v10  ;;  %v411_v27 = vmul.f32 %v972_v20, %v1214_v5  ;;  %v1260_v42 = vrot.slane %v1193_v61, %v457_v30 }
 0x139   :  { %v331_v34 = vmul.f32 %v1201_v52, %v962_v18  ;;  %v332_v46 = vmul.f32 %v1201_v52, %v922_v10  ;;  %v363_v47 = vmul.f32 %v967_v19, %v1204_v59  ;;  %v364_v6 = vmul.f32 %v927_v11, %v1204_v59 }
 0x13a   :  { %v395_v41 = vmul.f32 %v972_v20, %v1211_v4  ;;  %v379_v18 = vmul.f32 %v967_v19, %v1207_v51  ;;  %v396_v40 = vmul.f32 %v932_v12, %v1211_v4  ;;  %v427_v57 = vmul.f32 %v977_v21, %v1233_v49 }
 0x13b   :  { %v335_v56 = vmax.f32 %v331_v34, 0.0  ;;  %v336_v55 = vmax.f32 %v332_v46, 0.0  ;;  %v367_v1 = vmax.f32 %v363_v47, 0.0  ;;  %v368_v39 = vmax.f32 %v364_v6, 0.0 }
 0x13c   :  { %v428_v58 = vmul.f32 %v937_v13, %v1233_v49  ;;  %v380_v10 = vmul.f32 %v927_v11, %v1207_v51  ;;  %v412_v19 = vmul.f32 %v932_v12, %v1214_v5  ;;  %v399_v34 = vmax.f32 %v395_v41, 0.0 }
 0x13d   :  { %v351_v50 = vadd.f32 %v347_v35, %v335_v56  ;;  %v352_v38 = vadd.f32 %v348_v45, %v336_v55  ;;  %v1263_v46 = vrot.slane %v1193_v61, %v489_v44  ;;  %v400_v47 = vmax.f32 %v396_v40, 0.0 }
 0x13e   :  { %v443_v6 = vmul.f32 %v977_v21, %v1217_v0  ;;  %v444_v11 = vmul.f32 %v937_v13, %v1217_v0  ;;  %v459_v20 = vmul.f32 %v984_v23, %v1260_v42  ;;  %v431_v30 = vmax.f32 %v427_v57, 0.0 }
 0x13f   :  { %v371_v28 = vadd.f32 %v367_v1, %v351_v50  ;;  %v372_v22 = vadd.f32 %v368_v39, %v352_v38  ;;  %v432_v56 = vmax.f32 %v428_v58, 0.0  ;;  %v460_v55 = vmul.f32 %v942_v14, %v1260_v42 }
 0x140   :  { %v491_v44 = vmul.f32 %v989_v24, %v1263_v46  ;;  %v492_v45 = vmul.f32 %v947_v15, %v1263_v46  ;;  %v1278_v21 = vrot.slane %v1193_v61, %v521_v37  ;;  %v475_v1 = vmul.f32 %v984_v23, %v1220_v7 }
 0x141   :  { %v383_v12 = vadd.f32 %v379_v18, %v371_v28  ;;  %v384_v35 = vadd.f32 %v380_v10, %v372_v22  ;;  %v476_v39 = vmul.f32 %v942_v14, %v1220_v7  ;;  %v463_v18 = vmax.f32 %v459_v20, 0.0 }
 0x142   :  { %v507_v40 = vmul.f32 %v989_v24, %v1236_v8  ;;  %v508_v50 = vmul.f32 %v947_v15, %v1236_v8  ;;  %v523_v38 = vmul.f32 %v994_v25, %v1278_v21  ;;  %v524_v58 = vmul.f32 %v952_v16, %v1278_v21 }
 0x143   :  { %v403_v13 = vadd.f32 %v399_v34, %v383_v12  ;;  %v404_v41 = vadd.f32 %v400_v47, %v384_v35  ;;  %v333_v23 = vmul.f32 %v1201_v52, %v1082_v53  ;;  %v464_v10 = vmax.f32 %v460_v55, 0.0 }
 0x144   :  { %v495_v14 = vmax.f32 %v491_v44, 0.0  ;;  %v496_v28 = vmax.f32 %v492_v45, 0.0  ;;  %v539_v24 = vmul.f32 %v994_v25, %v1239_v9  ;;  %v540_v15 = vmul.f32 %v952_v16, %v1239_v9 }
 0x145   :  { %v415_v37 = vadd.f32 %v411_v27, %v403_v13  ;;  %v416_v57 = vadd.f32 %v412_v19, %v404_v41  ;;  %v1301_v27 = vrot.slane %v1193_v61, %v553_v3  ;;  %v527_v19 = vmax.f32 %v523_v38, 0.0  ;;  %v1437_v41 = vld [vmem:[#allocation2_spill] sm:$0xff] }
 0x146   :  { %v1306_v47 = vrot.slane %v1182_v63, %v553_v3  ;;  %v334_v20 = vmul.f32 %v1201_v52, %v1014_v32  ;;  %v337_v25 = vmax.f32 %v333_v23, 0.0  ;;  %v349_v16 = vmul.f32 %v1196_v43, %v1082_v53 }
 0x147   :  { %v435_v22 = vadd.f32 %v431_v30, %v415_v37  ;;  %v436_v34 = vadd.f32 %v432_v56, %v416_v57  ;;  %v528_v30 = vmax.f32 %v524_v58, 0.0  ;;  %v350_v61 = vmul.f32 %v1196_v43, %v1014_v32 }
 0x148   :  { %v338_v56 = vmax.f32 %v334_v20, 0.0  ;;  %v365_v48 = vmul.f32 %v1087_v54, %v1204_v59  ;;  %v366_v63 = vmul.f32 %v1019_v33, %v1204_v59  ;;  %v555_v52 = vmul.f32 %v1009_v31, %v1301_v27 }
 0x149   :  { %v447_v12 = vadd.f32 %v443_v6, %v435_v22  ;;  %v448_v35 = vadd.f32 %v444_v11, %v436_v34  ;;  %v353_v6 = vadd.f32 %v349_v16, %v337_v25  ;;  %v397_v53 = vmul.f32 %v1102_v60, %v1211_v4  ;;  %v1438_v34 = vld [vmem:[#allocation8_spill] sm:$0xff]  ;;  %v1439_v25 = vld [vmem:[#allocation3_spill] sm:$0xff] }
 0x14a   :  { %v354_v11 = vadd.f32 %v350_v61, %v338_v56  ;;  %v369_v44 = vmax.f32 %v365_v48, 0.0  ;;  %v370_v45 = vmax.f32 %v366_v63, 0.0  ;;  %v556_v43 = vmul.f32 %v957_v17, %v1301_v27 }
 0x14b   :  { %v467_v3 = vadd.f32 %v463_v18, %v447_v12  ;;  %v468_v55 = vadd.f32 %v464_v10, %v448_v35  ;;  %v398_v59 = vmul.f32 %v1437_v41, %v1211_v4  ;;  %v381_v37 = vmul.f32 %v1087_v54, %v1207_v51 }
 0x14c   :  { %v373_v18 = vadd.f32 %v369_v44, %v353_v6  ;;  %v374_v38 = vadd.f32 %v370_v45, %v354_v11  ;;  %v382_v57 = vmul.f32 %v1019_v33, %v1207_v51  ;;  %v401_v10 = vmax.f32 %v397_v53, 0.0 }
 0x14d   :  { %v479_v13 = vadd.f32 %v475_v1, %v467_v3  ;;  %v480_v32 = vadd.f32 %v476_v39, %v468_v55  ;;  %v402_v22 = vmax.f32 %v398_v59, 0.0  ;;  %v429_v20 = vmul.f32 %v1438_v34, %v1233_v49 }
 0x14e   :  { %v385_v1 = vadd.f32 %v381_v37, %v373_v18  ;;  %v386_v39 = vadd.f32 %v382_v57, %v374_v38  ;;  %v430_v4 = vmul.f32 %v1439_v25, %v1233_v49  ;;  %v571_v54 = vmul.f32 %v1009_v31, %v1306_v47 }
 0x14f   :  { %v499_v58 = vadd.f32 %v495_v14, %v479_v13  ;;  %v500_v23 = vadd.f32 %v496_v28, %v480_v32  ;;  %v572_v33 = vmul.f32 %v957_v17, %v1306_v47  ;;  %v413_v28 = vmul.f32 %v1102_v60, %v1214_v5 }
 0x150   :  { %v405_v51 = vadd.f32 %v401_v10, %v385_v1  ;;  %v406_v14 = vadd.f32 %v402_v22, %v386_v39  ;;  %v414_v16 = vmul.f32 %v1437_v41, %v1214_v5  ;;  %v461_v49 = vmul.f32 %v1120_v2, %v1260_v42  ;;  %v1441_v41 = vld [vmem:[#allocation9_spill] sm:$0xff] }
 0x151   :  { %v511_v12 = vadd.f32 %v507_v40, %v499_v58  ;;  %v512_v35 = vadd.f32 %v508_v50, %v500_v23  ;;  %v1440_v40 = vld [vmem:[#allocation4_spill] sm:$0xff]  ;;  %v433_v63 = vmax.f32 %v429_v20, 0.0  ;;  %v434_v17 = vmax.f32 %v430_v4, 0.0  ;;  %v1443_v23 = vld [vmem:[#allocation6_spill] sm:$0xff] }
 0x152   :  { %v462_v50 = vmul.f32 %v1440_v40, %v1260_v42  ;;  %v417_v31 = vadd.f32 %v413_v28, %v405_v51  ;;  %v418_v48 = vadd.f32 %v414_v16, %v406_v14  ;;  %v559_v6 = vmax.f32 %v555_v52, 0.0 }
 0x153   :  { %v531_v56 = vadd.f32 %v527_v19, %v511_v12  ;;  %v532_v61 = vadd.f32 %v528_v30, %v512_v35  ;;  %v560_v11 = vmax.f32 %v556_v43, 0.0  ;;  %v445_v5 = vmul.f32 %v1438_v34, %v1217_v0 }
 0x154   :  { %v437_v60 = vadd.f32 %v433_v63, %v417_v31  ;;  %v438_v44 = vadd.f32 %v434_v17, %v418_v48  ;;  %v446_v19 = vmul.f32 %v1439_v25, %v1217_v0  ;;  %v465_v53 = vmax.f32 %v461_v49, 0.0 }
 0x155   :  { %v543_v3 = vadd.f32 %v539_v24, %v531_v56  ;;  %v544_v55 = vadd.f32 %v540_v15, %v532_v61  ;;  %v466_v42 = vmax.f32 %v462_v50, 0.0  ;;  %v493_v24 = vmul.f32 %v1441_v41, %v1263_v46  ;;  %v1442_v15 = vld [vmem:[#allocation5_spill] sm:$0xff] }
 0x156   :  { %v449_v13 = vadd.f32 %v445_v5, %v437_v60  ;;  %v450_v32 = vadd.f32 %v446_v19, %v438_v44  ;;  %v494_v52 = vmul.f32 %v1442_v15, %v1263_v46  ;;  %v477_v37 = vmul.f32 %v1120_v2, %v1220_v7 }
 0x157   :  { %v563_v30 = vadd.f32 %v559_v6, %v543_v3  ;;  %v564_v45 = vadd.f32 %v560_v11, %v544_v55  ;;  %v478_v0 = vmul.f32 %v1440_v40, %v1220_v7  ;;  %v525_v58 = vmul.f32 %v1138_v26, %v1278_v21 }
 0x158   :  { %v469_v18 = vadd.f32 %v465_v53, %v449_v13  ;;  %v470_v38 = vadd.f32 %v466_v42, %v450_v32  ;;  %v526_v10 = vmul.f32 %v1443_v23, %v1278_v21  ;;  %v497_v46 = vmax.f32 %v493_v24, 0.0 }
 0x159   :  { %v575_v43 = vadd.f32 %v571_v54, %v563_v30  ;;  %v576_v59 = vadd.f32 %v572_v33, %v564_v45  ;;  %v498_v39 = vmax.f32 %v494_v52, 0.0  ;;  %v509_v2 = vmul.f32 %v1441_v41, %v1236_v8  ;;  %v1444_v54 = vld [vmem:[#allocation7_spill] sm:$0xff] }
 0x15a   :  { %v481_v22 = vadd.f32 %v477_v37, %v469_v18  ;;  %v482_v1 = vadd.f32 %v478_v0, %v470_v38  ;;  %v510_v7 = vmul.f32 %v1442_v15, %v1236_v8  ;;  %v529_v25 = vmax.f32 %v525_v58, 0.0 }
 0x15b   :  { %v826_v57 = vpack.c.bf16 %v576_v59, %v575_v43  ;;  %v530_v4 = vmax.f32 %v526_v10, 0.0  ;;  %v557_v21 = vmul.f32 %v1147_v29, %v1301_v27  ;;  %v558_v33 = vmul.f32 %v1444_v54, %v1301_v27 }
 0x15c   :  { %v501_v34 = vadd.f32 %v497_v46, %v481_v22  ;;  %v502_v20 = vadd.f32 %v498_v39, %v482_v1  ;;  %v541_v28 = vmul.f32 %v1138_v26, %v1239_v9  ;;  %v542_v16 = vmul.f32 %v1443_v23, %v1239_v9  ;;  %v580_v26 = vld [vmem:[%s1409_s4 + $0x8] sm:$0xff] }
 0x15d   :  { %827 = vmatprep.subr.bf16.mxu1 %v826_v57  ;;  %v561_v61 = vmax.f32 %v557_v21, 0.0  ;;  %v562_v49 = vmax.f32 %v558_v33, 0.0  ;;  %v573_v31 = vmul.f32 %v1147_v29, %v1306_v47  ;;  %v574_v27 = vmul.f32 %v1444_v54, %v1306_v47  ;;  %v581_v29 = vld [vmem:[%s1409_s4 + $0x10] sm:$0xff] }
 0x15e   :  { %829 = vmatpush3.bf16.msra.mxu1 %v826_v57  ;;  %v513_v12 = vadd.f32 %v509_v2, %v501_v34  ;;  %v514_v35 = vadd.f32 %v510_v7, %v502_v20 }
 0x160   :  { %v533_v51 = vadd.f32 %v529_v25, %v513_v12  ;;  %v534_v14 = vadd.f32 %v530_v4, %v514_v35 }
 0x162   :  { %v545_v56 = vadd.f32 %v541_v28, %v533_v51  ;;  %v546_v8 = vadd.f32 %v542_v16, %v534_v14 }
 0x164   :  { %v565_v40 = vadd.f32 %v561_v61, %v545_v56  ;;  %v566_v50 = vadd.f32 %v562_v49, %v546_v8 }
 0x166   :  { %v577_v48 = vadd.f32 %v573_v31, %v565_v40  ;;  %v578_v63 = vadd.f32 %v574_v27, %v566_v50 }
 0x168   :  { %v830_v17 = vpack.c.bf16 %v578_v63, %v577_v48 }
 0x16a   :  { %831 = vmatprep.subr.bf16.mxu1 %v830_v17 }
 0x16b   :  { %833 = vmatpush3.bf16.msra.mxu1 %v830_v17 }
 0x16c   :  { %835 = vmatprep.subr.bf16.mxu1 %v1157_v36 }
 0x16f   :  { %837 = vmatpush3.bf16.msra.mxu1 %v1157_v36  ;;  %v582_v36 = vld [vmem:[%s1409_s4 + $0x18] sm:$0xff] }
 0x170   :  { %839 = vmatprep.subr.bf16.mxu1 %v1165_v62 }
 0x173   :  { %841 = vmatpush3.bf16.msra.mxu1 %v1165_v62 }
 0x176   :  { %813 = vmatmul.mubr.msk.f32.vlgmr.msra.gmra.mrb[0].mxu1 %vm583_vm7, %v580_v26 }
 0x177   :  { %815 = vmatprep.mubr.msk.f32.mxu1 %vm583_vm7, %v581_v29 }
 0x17a   :  { %816 = vmatmul.mubr.msk.f32.gmra.mrb[2].mxu1 %vm583_vm7, %v582_v36 }
 0x249   :  { %v814_v9 = vpop.f32.mrb[0].mxu1 }
 0x24a   :  { %848 = vtanh.f32 %v814_v9  ;;  %v662_v62 = vpop.f32.mrb[1].mxu1 }
 0x24b   :  { %850 = vtanh.f32 %v662_v62 }
 0x24d   :  { %v817_v47 = vpop.f32.mrb[2].mxu1 }
 0x24e   :  { %852 = vtanh.f32 %v817_v47  ;;  %v672_v3 = vpop.f32.mrb[3].mxu1 }
 0x24f   :  { %854 = vtanh.f32 %v672_v3 }
 0x254   :  { %v849_v55 = vpop.eup %848 }
 0x255   :  { %v851_v6 = vpop.eup %850  ;;  %686 = vst [vmem:[%s1412_s5 + $0x8] sm:$0xff] %v849_v55 }
 0x256   :  { %685 = vst [vmem:[%s1412_s5] sm:$0xff] %v851_v6 }
 0x258   :  { %v853_v11 = vpop.eup %852 }
 0x259   :  { %v855_v60 = vpop.eup %854  ;;  %688 = vst [vmem:[%s1412_s5 + $0x18] sm:$0xff] %v853_v11 }
 0x25a   :  { %687 = vst [vmem:[%s1412_s5 + $0x10] sm:$0xff] %v855_v60 }

</bundles_post_ra>
